<compile_context>
chip_gen: v7x
topology: tpu7x:2x2x1
jax: 0.10.0
libtpu: 0.0.40
codegen_flags: <defaults>
</compile_context>

<pallas_src>
import jax
import jax.numpy as jnp
from jax.experimental import pallas as pl
from jax.experimental.pallas import tpu as pltpu


def _round_up(n: int, m: int) -> int:
    return ((n + m - 1) // m) * m


def mlp_softmax_kernel(w1_ref, b1_ref, w2d_ref, b2d_ref, x_ref, o_ref):
    # x_ref: (3, tile_s, 128) VMEM block, batch on (sublane, lane).
    # w1_ref: (3,4), b1_ref: (4,), w2d_ref: (4,), b2d_ref: (1,)  -- SMEM scalars.
    x0 = x_ref[0]                       # (tile_s, 128) f32
    x1 = x_ref[1]
    x2 = x_ref[2]

    # Hidden layer (ReLU) fused directly into the single class-difference logit:
    #   d = sum_j relu(x @ w1[:,j] + b1[j]) * (w2[j,0] - w2[j,1]) + (b2[0] - b2[1])
    acc = None
    for j in range(4):
        h = jnp.maximum(
            x0 * w1_ref[0, j] + x1 * w1_ref[1, j] + x2 * w1_ref[2, j] + b1_ref[j],
            0.0,
        )
        term = h * w2d_ref[j]
        acc = term if acc is None else acc + term
    d = acc + b2d_ref[0]

    # 2-class softmax without cross-lane reductions (exact):
    #   softmax([l0, l1]) == [sigmoid(l0-l1), sigmoid(l1-l0)]
    o_ref[0] = jax.nn.sigmoid(d).astype(o_ref.dtype)
    o_ref[1] = jax.nn.sigmoid(-d).astype(o_ref.dtype)


def my_model_forward(x, w1, b1, w2, b2, *, tile_s=2048):
    """x: (B, 3) f32 (PyTorch layout). w1: (3,4), b1: (4,), w2: (4,2), b2: (2,)."""
    B = x.shape[0]

    # Batch laid out on (sublane, lane): pad to a multiple of 128 columns, view as
    # (3, S, 128), then pad S to a multiple of the tile.
    cols = max(_round_up(B, 128), 128)
    S = cols // 128
    tile_s = max(1, min(tile_s, S))
    S_pad = _round_up(S, tile_s)
    cols = S_pad * 128

    x_t = jnp.zeros((3, cols), jnp.float32).at[:, :B].set(x.T.astype(jnp.float32))
    x_3d = x_t.reshape(3, S_pad, 128)

    # Pre-difference the output layer once (scalar work, done outside the kernel).
    w2d = (w2[:, 0] - w2[:, 1]).astype(jnp.float32)        # (4,)
    b2d = (b2[0] - b2[1]).reshape(1).astype(jnp.float32)   # (1,)

    grid = (S_pad // tile_s,)
    smem = pl.BlockSpec(memory_space=pltpu.MemorySpace.SMEM)

    out_3d = pl.pallas_call(
        mlp_softmax_kernel,
        out_shape=jax.ShapeDtypeStruct((2, S_pad, 128), jnp.float32),
        grid=grid,
        in_specs=[
            smem,                                                  # w1 (3,4)  resident
            smem,                                                  # b1 (4,)   resident
            smem,                                                  # w2d (4,)  resident
            smem,                                                  # b2d (1,)  resident
            pl.BlockSpec((3, tile_s, 128), lambda i: (0, i, 0)),   # x streamed
        ],
        out_specs=pl.BlockSpec((2, tile_s, 128), lambda i: (0, i, 0)),
        compiler_params=pltpu.CompilerParams(
            dimension_semantics=("parallel",),
        ),
    )(w1.astype(jnp.float32), b1.astype(jnp.float32), w2d, b2d, x_3d)

    # Back to PyTorch layout (B, 2); drop batch padding.
    return out_3d.reshape(2, cols)[:, :B].T


def init_params(key):
    # Mimic PyTorch's uniform(-1/sqrt(fan_in), +1/sqrt(fan_in)) init.
    k1, k2, k3, k4 = jax.random.split(key, 4)
    lim1 = 1.0 / jnp.sqrt(3.0)
    lim2 = 1.0 / jnp.sqrt(4.0)
    w1 = jax.random.uniform(k1, (3, 4), jnp.float32, -lim1, lim1)   # [in, out] (transposed vs torch)
    b1 = jax.random.uniform(k2, (4,), jnp.float32, -lim1, lim1)
    w2 = jax.random.uniform(k3, (4, 2), jnp.float32, -lim2, lim2)
    b2 = jax.random.uniform(k4, (2,), jnp.float32, -lim2, lim2)
    return w1, b1, w2, b2


if __name__ == "__main__":
    batch = 8
    key = jax.random.PRNGKey(0)
    kx, kp = jax.random.split(key, 2)
    x = jax.random.normal(kx, (batch, 3), jnp.float32)
    w1, b1, w2, b2 = init_params(kp)

    out = my_model_forward(x, w1, b1, w2, b2)
    out = jax.block_until_ready(out)

    # Pure-JAX reference (same math as the PyTorch module).
    ref = jax.nn.softmax(jnp.maximum(x @ w1 + b1, 0.0) @ w2 + b2, axis=1)
    assert out.shape == (batch, 2)
    assert jnp.allclose(out, ref, atol=1e-5), "mismatch vs reference"

    print("KERNEL_OK")
</pallas_src>

<mosaic_0001>
module attributes {stable_mosaic.version = 11 : i64} {
  func.func @mlp_softmax_kernel(%arg0: i32, %arg1: memref<3x4xf32, #tpu.memory_space<smem>>, %arg2: memref<4xf32, #tpu.memory_space<smem>>, %arg3: memref<4xf32, #tpu.memory_space<smem>>, %arg4: memref<1xf32, #tpu.memory_space<smem>>, %arg5: memref<3x1x128xf32, #tpu.memory_space<vmem>>, %arg6: memref<2x1x128xf32, #tpu.memory_space<vmem>>) attributes {dimension_semantics = [#tpu.dimension_semantics<parallel>], iteration_bounds = array<i64: 1>, scalar_prefetch = 0 : i64, scratch_operands = 0 : i64, tpu.core_type = #tpu.core_type<tc>, window_params = [{transform_indices = @transform_0, window_bounds = array<i64: 3, 4>}, {transform_indices = @transform_1, window_bounds = array<i64: 4>}, {transform_indices = @transform_2, window_bounds = array<i64: 4>}, {transform_indices = @transform_3, window_bounds = array<i64: 1>}, {transform_indices = @transform_4, window_bounds = array<i64: 3, 1, 128>}, {transform_indices = @transform_5, window_bounds = array<i64: 2, 1, 128>}]} {
    %c0 = arith.constant 0 : index
    %c0_0 = arith.constant 0 : index
    %c0_1 = arith.constant 0 : index
    %0 = vector.load %arg5[%c0, %c0_0, %c0_1] : memref<3x1x128xf32, #tpu.memory_space<vmem>>, vector<1x1x128xf32>
    %1 = vector.shape_cast %0 : vector<1x1x128xf32> to vector<1x128xf32>
    %c1 = arith.constant 1 : index
    %c0_2 = arith.constant 0 : index
    %c0_3 = arith.constant 0 : index
    %2 = vector.load %arg5[%c1, %c0_2, %c0_3] : memref<3x1x128xf32, #tpu.memory_space<vmem>>, vector<1x1x128xf32>
    %3 = vector.shape_cast %2 : vector<1x1x128xf32> to vector<1x128xf32>
    %c2 = arith.constant 2 : index
    %c0_4 = arith.constant 0 : index
    %c0_5 = arith.constant 0 : index
    %4 = vector.load %arg5[%c2, %c0_4, %c0_5] : memref<3x1x128xf32, #tpu.memory_space<vmem>>, vector<1x1x128xf32>
    %5 = vector.shape_cast %4 : vector<1x1x128xf32> to vector<1x128xf32>
    %c0_6 = arith.constant 0 : index
    %c0_7 = arith.constant 0 : index
    %6 = memref.load %arg1[%c0_6, %c0_7] : memref<3x4xf32, #tpu.memory_space<smem>>
    %7 = vector.broadcast %6 : f32 to vector<1x128xf32>
    %8 = arith.mulf %1, %7 : vector<1x128xf32>
    %c1_8 = arith.constant 1 : index
    %c0_9 = arith.constant 0 : index
    %9 = memref.load %arg1[%c1_8, %c0_9] : memref<3x4xf32, #tpu.memory_space<smem>>
    %10 = vector.broadcast %9 : f32 to vector<1x128xf32>
    %11 = arith.mulf %3, %10 : vector<1x128xf32>
    %12 = arith.addf %8, %11 : vector<1x128xf32>
    %c2_10 = arith.constant 2 : index
    %c0_11 = arith.constant 0 : index
    %13 = memref.load %arg1[%c2_10, %c0_11] : memref<3x4xf32, #tpu.memory_space<smem>>
    %14 = vector.broadcast %13 : f32 to vector<1x128xf32>
    %15 = arith.mulf %5, %14 : vector<1x128xf32>
    %16 = arith.addf %12, %15 : vector<1x128xf32>
    %c0_12 = arith.constant 0 : index
    %17 = memref.load %arg2[%c0_12] : memref<4xf32, #tpu.memory_space<smem>>
    %18 = vector.broadcast %17 : f32 to vector<1x128xf32>
    %19 = arith.addf %16, %18 : vector<1x128xf32>
    %cst = arith.constant 0.000000e+00 : f32
    %20 = vector.broadcast %cst : f32 to vector<1x128xf32>
    %21 = arith.maximumf %19, %20 : vector<1x128xf32>
    %c0_13 = arith.constant 0 : index
    %22 = memref.load %arg3[%c0_13] : memref<4xf32, #tpu.memory_space<smem>>
    %23 = vector.broadcast %22 : f32 to vector<1x128xf32>
    %24 = arith.mulf %21, %23 : vector<1x128xf32>
    %c0_14 = arith.constant 0 : index
    %c1_15 = arith.constant 1 : index
    %25 = memref.load %arg1[%c0_14, %c1_15] : memref<3x4xf32, #tpu.memory_space<smem>>
    %26 = vector.broadcast %25 : f32 to vector<1x128xf32>
    %27 = arith.mulf %1, %26 : vector<1x128xf32>
    %c1_16 = arith.constant 1 : index
    %c1_17 = arith.constant 1 : index
    %28 = memref.load %arg1[%c1_16, %c1_17] : memref<3x4xf32, #tpu.memory_space<smem>>
    %29 = vector.broadcast %28 : f32 to vector<1x128xf32>
    %30 = arith.mulf %3, %29 : vector<1x128xf32>
    %31 = arith.addf %27, %30 : vector<1x128xf32>
    %c2_18 = arith.constant 2 : index
    %c1_19 = arith.constant 1 : index
    %32 = memref.load %arg1[%c2_18, %c1_19] : memref<3x4xf32, #tpu.memory_space<smem>>
    %33 = vector.broadcast %32 : f32 to vector<1x128xf32>
    %34 = arith.mulf %5, %33 : vector<1x128xf32>
    %35 = arith.addf %31, %34 : vector<1x128xf32>
    %c1_20 = arith.constant 1 : index
    %36 = memref.load %arg2[%c1_20] : memref<4xf32, #tpu.memory_space<smem>>
    %37 = vector.broadcast %36 : f32 to vector<1x128xf32>
    %38 = arith.addf %35, %37 : vector<1x128xf32>
    %cst_21 = arith.constant 0.000000e+00 : f32
    %39 = vector.broadcast %cst_21 : f32 to vector<1x128xf32>
    %40 = arith.maximumf %38, %39 : vector<1x128xf32>
    %c1_22 = arith.constant 1 : index
    %41 = memref.load %arg3[%c1_22] : memref<4xf32, #tpu.memory_space<smem>>
    %42 = vector.broadcast %41 : f32 to vector<1x128xf32>
    %43 = arith.mulf %40, %42 : vector<1x128xf32>
    %44 = arith.addf %24, %43 : vector<1x128xf32>
    %c0_23 = arith.constant 0 : index
    %c2_24 = arith.constant 2 : index
    %45 = memref.load %arg1[%c0_23, %c2_24] : memref<3x4xf32, #tpu.memory_space<smem>>
    %46 = vector.broadcast %45 : f32 to vector<1x128xf32>
    %47 = arith.mulf %1, %46 : vector<1x128xf32>
    %c1_25 = arith.constant 1 : index
    %c2_26 = arith.constant 2 : index
    %48 = memref.load %arg1[%c1_25, %c2_26] : memref<3x4xf32, #tpu.memory_space<smem>>
    %49 = vector.broadcast %48 : f32 to vector<1x128xf32>
    %50 = arith.mulf %3, %49 : vector<1x128xf32>
    %51 = arith.addf %47, %50 : vector<1x128xf32>
    %c2_27 = arith.constant 2 : index
    %c2_28 = arith.constant 2 : index
    %52 = memref.load %arg1[%c2_27, %c2_28] : memref<3x4xf32, #tpu.memory_space<smem>>
    %53 = vector.broadcast %52 : f32 to vector<1x128xf32>
    %54 = arith.mulf %5, %53 : vector<1x128xf32>
    %55 = arith.addf %51, %54 : vector<1x128xf32>
    %c2_29 = arith.constant 2 : index
    %56 = memref.load %arg2[%c2_29] : memref<4xf32, #tpu.memory_space<smem>>
    %57 = vector.broadcast %56 : f32 to vector<1x128xf32>
    %58 = arith.addf %55, %57 : vector<1x128xf32>
    %cst_30 = arith.constant 0.000000e+00 : f32
    %59 = vector.broadcast %cst_30 : f32 to vector<1x128xf32>
    %60 = arith.maximumf %58, %59 : vector<1x128xf32>
    %c2_31 = arith.constant 2 : index
    %61 = memref.load %arg3[%c2_31] : memref<4xf32, #tpu.memory_space<smem>>
    %62 = vector.broadcast %61 : f32 to vector<1x128xf32>
    %63 = arith.mulf %60, %62 : vector<1x128xf32>
    %64 = arith.addf %44, %63 : vector<1x128xf32>
    %c0_32 = arith.constant 0 : index
    %c3 = arith.constant 3 : index
    %65 = memref.load %arg1[%c0_32, %c3] : memref<3x4xf32, #tpu.memory_space<smem>>
    %66 = vector.broadcast %65 : f32 to vector<1x128xf32>
    %67 = arith.mulf %1, %66 : vector<1x128xf32>
    %c1_33 = arith.constant 1 : index
    %c3_34 = arith.constant 3 : index
    %68 = memref.load %arg1[%c1_33, %c3_34] : memref<3x4xf32, #tpu.memory_space<smem>>
    %69 = vector.broadcast %68 : f32 to vector<1x128xf32>
    %70 = arith.mulf %3, %69 : vector<1x128xf32>
    %71 = arith.addf %67, %70 : vector<1x128xf32>
    %c2_35 = arith.constant 2 : index
    %c3_36 = arith.constant 3 : index
    %72 = memref.load %arg1[%c2_35, %c3_36] : memref<3x4xf32, #tpu.memory_space<smem>>
    %73 = vector.broadcast %72 : f32 to vector<1x128xf32>
    %74 = arith.mulf %5, %73 : vector<1x128xf32>
    %75 = arith.addf %71, %74 : vector<1x128xf32>
    %c3_37 = arith.constant 3 : index
    %76 = memref.load %arg2[%c3_37] : memref<4xf32, #tpu.memory_space<smem>>
    %77 = vector.broadcast %76 : f32 to vector<1x128xf32>
    %78 = arith.addf %75, %77 : vector<1x128xf32>
    %cst_38 = arith.constant 0.000000e+00 : f32
    %79 = vector.broadcast %cst_38 : f32 to vector<1x128xf32>
    %80 = arith.maximumf %78, %79 : vector<1x128xf32>
    %c3_39 = arith.constant 3 : index
    %81 = memref.load %arg3[%c3_39] : memref<4xf32, #tpu.memory_space<smem>>
    %82 = vector.broadcast %81 : f32 to vector<1x128xf32>
    %83 = arith.mulf %80, %82 : vector<1x128xf32>
    %84 = arith.addf %64, %83 : vector<1x128xf32>
    %c0_40 = arith.constant 0 : index
    %85 = memref.load %arg4[%c0_40] : memref<1xf32, #tpu.memory_space<smem>>
    %86 = vector.broadcast %85 : f32 to vector<1x128xf32>
    %87 = arith.addf %84, %86 : vector<1x128xf32>
    %88 = arith.negf %87 : vector<1x128xf32>
    %89 = math.exp %88 : vector<1x128xf32>
    %cst_41 = arith.constant 1.000000e+00 : f32
    %90 = vector.broadcast %cst_41 : f32 to vector<1x128xf32>
    %91 = arith.addf %90, %89 : vector<1x128xf32>
    %92 = arith.divf %90, %91 : vector<1x128xf32>
    %c0_42 = arith.constant 0 : index
    %c0_43 = arith.constant 0 : index
    %c0_44 = arith.constant 0 : index
    %93 = vector.load %arg6[%c0_42, %c0_43, %c0_44] : memref<2x1x128xf32, #tpu.memory_space<vmem>>, vector<1x1x128xf32>
    %94 = vector.shape_cast %93 : vector<1x1x128xf32> to vector<1x128xf32>
    %95 = vector.shape_cast %92 : vector<1x128xf32> to vector<1x1x128xf32>
    tpu.vector_store %arg6[%c0_42, %c0_43, %c0_44], %95 {strides = array<i32>} : memref<2x1x128xf32, #tpu.memory_space<vmem>>, vector<1x1x128xf32>,
    %cst_45 = arith.constant 0.000000e+00 : f32
    %96 = vector.broadcast %cst_45 : f32 to vector<1x128xf32>
    %97 = arith.subf %96, %87 : vector<1x128xf32>
    %98 = arith.negf %97 : vector<1x128xf32>
    %99 = math.exp %98 : vector<1x128xf32>
    %cst_46 = arith.constant 1.000000e+00 : f32
    %100 = vector.broadcast %cst_46 : f32 to vector<1x128xf32>
    %101 = arith.addf %100, %99 : vector<1x128xf32>
    %102 = arith.divf %100, %101 : vector<1x128xf32>
    %c1_47 = arith.constant 1 : index
    %c0_48 = arith.constant 0 : index
    %c0_49 = arith.constant 0 : index
    %103 = vector.load %arg6[%c1_47, %c0_48, %c0_49] : memref<2x1x128xf32, #tpu.memory_space<vmem>>, vector<1x1x128xf32>
    %104 = vector.shape_cast %103 : vector<1x1x128xf32> to vector<1x128xf32>
    %105 = vector.shape_cast %102 : vector<1x128xf32> to vector<1x1x128xf32>
    tpu.vector_store %arg6[%c1_47, %c0_48, %c0_49], %105 {strides = array<i32>} : memref<2x1x128xf32, #tpu.memory_space<vmem>>, vector<1x1x128xf32>,
    return
  }
  func.func @transform_0(%arg0: i32) -> (i32, i32) {
    %c0_i32 = arith.constant 0 : i32
    %c0_i32_0 = arith.constant 0 : i32
    %c0_i32_1 = arith.constant 0 : i32
    return %c0_i32, %c0_i32_0 : i32, i32
  }
  func.func @transform_1(%arg0: i32) -> i32 {
    %c0_i32 = arith.constant 0 : i32
    %c0_i32_0 = arith.constant 0 : i32
    return %c0_i32 : i32
  }
  func.func @transform_2(%arg0: i32) -> i32 {
    %c0_i32 = arith.constant 0 : i32
    %c0_i32_0 = arith.constant 0 : i32
    return %c0_i32 : i32
  }
  func.func @transform_3(%arg0: i32) -> i32 {
    %c0_i32 = arith.constant 0 : i32
    %c0_i32_0 = arith.constant 0 : i32
    return %c0_i32 : i32
  }
  func.func @transform_4(%arg0: i32) -> (i32, i32, i32) {
    %c0_i32 = arith.constant 0 : i32
    %c0_i32_0 = arith.constant 0 : i32
    %c0_i32_1 = arith.constant 0 : i32
    return %c0_i32, %arg0, %c0_i32_0 : i32, i32, i32
  }
  func.func @transform_5(%arg0: i32) -> (i32, i32, i32) {
    %c0_i32 = arith.constant 0 : i32
    %c0_i32_0 = arith.constant 0 : i32
    %c0_i32_1 = arith.constant 0 : i32
    return %c0_i32, %arg0, %c0_i32_0 : i32, i32, i32
  }
}

</mosaic_0001>

<bundles_post_ra>
// kernel: tpu_custom_call.1
= control target key start
LH: loop header
LB: loop body
LE: loop exit
PB: predicated region body
PF: predicated region fallthrough
CT: control target
= control target key end

     0   :  { %11 = vsyncpa [#allocation5], 0  ;;  %s385_s0 = inlined_call_operand.hbm [shape: f32[3,4], index: 0, kind: input, shape index: {}]   ;;  %s386_s1 = inlined_call_operand.vmem [shape: f32[4], index: 1, kind: input, shape index: {}]   ;;  %s387_s2 = inlined_call_operand.vmem [shape: f32[4], index: 2, kind: input, shape index: {}]   ;;  %s388_s3 = inlined_call_operand.<no memory space> [shape: f32[1], index: 3, kind: input, shape index: {}]   ;;  %s389_s4 = inlined_call_operand.vmem [shape: f32[3,1,128], index: 4, kind: input, shape index: {}]   ;;  %s390_s5 = inlined_call_operand.hbm [shape: f32[2,1,128], index: 5, kind: output, shape index: {}]  }
   0x1   :  { %12 = vsyncpa [#allocation6], 0 }
   0x2   :  { %13 = vsyncpa [#allocation9], 0 }
   0x3   :  { %14 = vsyncpa [#allocation4], 0  ;;  %s29_s20 = sshll.u32 %s386_s1, 4  ;;  %s210_s23 = scalar_lea.hbm %s385_s0, 64  ;;  %s30_s20 = int_to_ptr.vmem [resolvable:$true] %s29_s20 }
   0x4   :  { %p211_p0 = scmp.ne.s32.totalorder %s385_s0, %s210_s23  ;;  %p214_p1 = scmp.lt.u32.totalorder %s210_s23, %s385_s0 }
   0x6   :  { %p216_p2 = pnand %p214_p1, %p211_p0 }
   0x8   :  { %219 = shalt.err (!%p216_p2)
}
   0x9   :  { %s274_s28 = smov [#allocation3]   ;;  %s220_s1 = scalar_lea.vmem %s30_s20, 16 }
   0xa   :  { %22 = dma.hbm_to_smem %s385_s0, 64, %s274_s28, [#allocation5]  }
   0xb   :  { %p221_p3 = scmp.ne.s32.totalorder %s30_s20, %s220_s1  ;;  %p225_p4 = scmp.lt.s32.totalorder %s30_s20, %s30_s20 }
   0xc   :  { %p226_p5 = scmp.lt.s32.totalorder %s220_s1, %s220_s1 }
   0xe   :  { %p227_p6 = por %p226_p5, %p225_p4 }
  0x10   :  { %p228_p7 = pnand %p227_p6, %p221_p3 }
  0x12   :  { %231 = shalt.err (!%p228_p7)
}
  0x13   :  { %s275_s6 = smov [#allocation7]   ;;  %s39_s9 = sshll.u32 %s387_s2, 4  ;;  %s40_s9 = int_to_ptr.vmem [resolvable:$true] %s39_s9 }
  0x14   :  { %32 = dma.vmem_to_smem %s30_s20, 16, %s275_s6, [#allocation6]  }
  0x15   :  { %s232_s10 = scalar_lea.vmem %s40_s9, 16  ;;  %p237_p9 = scmp.lt.s32.totalorder %s40_s9, %s40_s9 }
  0x16   :  { %p233_p8 = scmp.ne.s32.totalorder %s40_s9, %s232_s10  ;;  %p238_p10 = scmp.lt.s32.totalorder %s232_s10, %s232_s10 }
  0x18   :  { %p239_p11 = por %p238_p10, %p237_p9 }
  0x1a   :  { %p240_p12 = pnand %p239_p11, %p233_p8 }
  0x1c   :  { %243 = shalt.err (!%p240_p12)
}
  0x1d   :  { %s276_s0 = smov [#allocation8]  }
  0x1e   :  { %42 = dma.vmem_to_smem %s40_s9, 16, %s276_s0, [#allocation9]  }
  0x1f   :  { %266 = dma.done.wait [#allocation5], 64  }
  0x20   :  { %267 = vsyncadd [#allocation5], 4294967232 }
  0x21   :  { %268 = dma.done.wait [#allocation6], 16  }
  0x22   :  { %269 = vsyncadd [#allocation6], 4294967280 }
  0x23   :  { %270 = dma.done.wait [#allocation9], 16  }
  0x24   :  { %271 = vsyncadd [#allocation9], 4294967280 }
  0x25   :  { %56 = sfence }
  0x26   :  { %s62_s11 = sld [smem:[#allocation3]]  ;;  %s179_s15 = sld [smem:[#allocation3 + $0x1]]  ;;  %v57_v0 = vld [vmem:[%s389_s4] sm:$0x1]  ;;  %v175_v1 = vld [vmem:[%s389_s4 + $0x1] sm:$0x1]  ;;  %v138_v57 = vstv %s388_s3 }
  0x27   :  { %s177_s12 = sld [smem:[#allocation3 + $0x80]]  ;;  %s180_s16 = sld [smem:[#allocation3 + $0x81]]  ;;  %v176_v2 = vld [vmem:[%s389_s4 + $0x2] sm:$0x1] }
  0x28   :  { %s178_s2 = sld [smem:[#allocation3 + $0x100]]  ;;  %s181_s17 = sld [smem:[#allocation3 + $0x101]] }
  0x29   :  { %s328_s13 = sld [smem:[#allocation7]]  ;;  %s338_s22 = sld [smem:[#allocation7 + $0x1]] }
  0x2a   :  { %s330_s14 = sld [smem:[#allocation8]]  ;;  %s184_s25 = sld [smem:[#allocation3 + $0x2]] }
  0x2b   :  { %s185_s26 = sld [smem:[#allocation3 + $0x82]]  ;;  %s347_s29 = sld [smem:[#allocation3 + $0x3]] }
  0x2c   :  { %v63_v3 = vstv %s62_s11  ;;  %s343_s27 = sld [smem:[#allocation3 + $0x102]]  ;;  %v81_v9 = vstv %s179_s15  ;;  %s349_s30 = sld [smem:[#allocation3 + $0x83]] }
  0x2d   :  { %v66_v4 = vstv %s177_s12  ;;  %s345_s28 = sld [smem:[#allocation7 + $0x2]]  ;;  %v64_v5 = vmul.f32 %v63_v3, %v57_v0  ;;  %s351_s4 = sld [smem:[#allocation3 + $0x103]]  ;;  %v82_v11 = vmul.f32 %v81_v9, %v57_v0  ;;  %v84_v12 = vstv %s180_s16 }
  0x2e   :  { %v67_v6 = vmul.f32 %v175_v1, %v66_v4  ;;  %v70_v7 = vstv %s178_s2  ;;  %v88_v13 = vstv %s181_s17  ;;  %s353_s1 = sld [smem:[#allocation8 + $0x1]]  ;;  %v85_v15 = vmul.f32 %v175_v1, %v84_v12  ;;  %s356_s6 = sld [smem:[#allocation7 + $0x3]] }
  0x2f   :  { %v71_v8 = vmul.f32 %v176_v2, %v70_v7  ;;  %v74_v14 = vstv %s328_s13  ;;  %v89_v16 = vmul.f32 %v176_v2, %v88_v13  ;;  %s359_s7 = sld [smem:[#allocation8 + $0x2]]  ;;  %v92_v26 = vstv %s338_s22  ;;  %s193_s8 = sld [smem:[#allocation8 + $0x3]] }
  0x30   :  { %v68_v10 = vadd.f32 %v67_v6, %v64_v5  ;;  %v78_v18 = vstv %s330_s14  ;;  %v100_v19 = vstv %s184_s25  ;;  %v86_v21 = vadd.f32 %v85_v15, %v82_v11  ;;  %s277_s0 = smov [#allocation10]  }
  0x31   :  { %v103_v20 = vstv %s185_s26  ;;  %v101_v22 = vmul.f32 %v100_v19, %v57_v0  ;;  %v119_v31 = vstv %s347_s29  ;;  %s161_s11 = sshll.u32 %s277_s0, 4  ;;  %s162_s11 = int_to_ptr.vmem [resolvable:$true] %s161_s11 }
  0x32   :  { %v72_v17 = vadd.f32 %v71_v8, %v68_v10  ;;  %v104_v23 = vmul.f32 %v175_v1, %v103_v20  ;;  %v107_v24 = vstv %s343_s27  ;;  %v90_v29 = vadd.f32 %v89_v16, %v86_v21  ;;  %s244_s3 = scalar_lea.vmem %s162_s11, 32  ;;  %p249_p0 = scmp.lt.s32.totalorder %s162_s11, %s162_s11 }
  0x33   :  { %v108_v27 = vmul.f32 %v176_v2, %v107_v24  ;;  %v111_v28 = vstv %s345_s28  ;;  %v122_v32 = vstv %s349_s30  ;;  %v120_v34 = vmul.f32 %v119_v31, %v57_v0  ;;  %p245_p13 = scmp.ne.s32.totalorder %s162_s11, %s244_s3  ;;  %p250_p1 = scmp.lt.s32.totalorder %s244_s3, %s244_s3 }
  0x34   :  { %v75_v25 = vadd.f32 %v74_v14, %v72_v17  ;;  %v105_v30 = vadd.f32 %v104_v23, %v101_v22  ;;  %v123_v35 = vmul.f32 %v175_v1, %v122_v32  ;;  %v126_v36 = vstv %s351_s4 }
  0x35   :  { %v93_v37 = vadd.f32 %v92_v26, %v90_v29  ;;  %v127_v39 = vmul.f32 %v176_v2, %v126_v36  ;;  %v96_v40 = vstv %s353_s1  ;;  %v130_v45 = vstv %s356_s6  ;;  %p251_p2 = por %p250_p1, %p249_p0 }
  0x36   :  { %v76_v33 = vmax.f32 %v75_v25, 0.0  ;;  %v109_v38 = vadd.f32 %v108_v27, %v105_v30  ;;  %v124_v41 = vadd.f32 %v123_v35, %v120_v34  ;;  %v115_v46 = vstv %s359_s7 }
  0x37   :  { %v94_v43 = vmax.f32 %v93_v37, 0.0  ;;  %v134_v53 = vstv %s193_s8  ;;  %p252_p3 = pnand %p251_p2, %p245_p13 }
  0x38   :  { %v79_v42 = vmul.f32 %v78_v18, %v76_v33  ;;  %v112_v44 = vadd.f32 %v111_v28, %v109_v38  ;;  %v128_v47 = vadd.f32 %v127_v39, %v124_v41 }
  0x39   :  { %v97_v48 = vmul.f32 %v96_v40, %v94_v43 }
  0x3a   :  { %v113_v49 = vmax.f32 %v112_v44, 0.0  ;;  %v131_v50 = vadd.f32 %v130_v45, %v128_v47 }
  0x3b   :  { %v98_v51 = vadd.f32 %v97_v48, %v79_v42 }
  0x3c   :  { %v116_v52 = vmul.f32 %v115_v46, %v113_v49  ;;  %v132_v54 = vmax.f32 %v131_v50, 0.0 }
  0x3e   :  { %v117_v55 = vadd.f32 %v116_v52, %v98_v51  ;;  %v135_v56 = vmul.f32 %v134_v53, %v132_v54 }
  0x40   :  { %v136_v58 = vadd.f32 %v135_v56, %v117_v55 }
  0x42   :  { %v139_v59 = vadd.f32 %v138_v57, %v136_v58 }
  0x44   :  { %v194_v60 = vmul.f32 -1.442695, %v139_v59  ;;  %v147_v61 = vsub.f32 0.0, %v139_v59 }
  0x46   :  { %202 = vpow2.f32 %v194_v60  ;;  %v195_v62 = vmul.f32 -1.442695, %v147_v61 }
  0x48   :  { %204 = vpow2.f32 %v195_v62 }
  0x50   :  { %v203_v63 = vpop.eup %202 }
  0x51   :  { %v143_v0 = vadd.f32 1.0, %v203_v63 }
  0x52   :  { %v205_v1 = vpop.eup %204 }
  0x53   :  { %206 = vrcp.f32 %v143_v0  ;;  %v151_v2 = vadd.f32 1.0, %v205_v1 }
  0x55   :  { %208 = vrcp.f32 %v151_v2 }
  0x5d   :  { %v207_v3 = vpop.eup %206 }
  0x5e   :  { %146 = vst [vmem:[#allocation10] sm:$0x1] %v207_v3 }
  0x5f   :  { %v209_v4 = vpop.eup %208 }
  0x60   :  { %155 = vst [vmem:[#allocation10 + $0x1] sm:$0x1] %v209_v4 }
  0x61   :  { %255 = shalt.err (!%p252_p3)
}
  0x62   :  { %s256_s13 = scalar_lea.hbm %s390_s5, 32 }
  0x63   :  { %p257_p4 = scmp.ne.s32.totalorder %s390_s5, %s256_s13  ;;  %p260_p5 = scmp.lt.u32.totalorder %s256_s13, %s390_s5 }
  0x65   :  { %p262_p6 = pnand %p260_p5, %p257_p4 }
  0x67   :  { %265 = shalt.err (!%p262_p6)
}
  0x68   :  { %s278_s18 = smov 16   ;;  %s279_s19 = smov 1  }
  0x69   :  { %167 = dma.vmem_to_hbm [thread:$0]  %s162_s11, 32, %s390_s5, [#allocation4], %s278_s18, %s278_s18, %s279_s19  }
  0x6a   :  { %272 = dma.done.wait [#allocation4], 32  }
  0x6b   :  { %273 = vsyncadd [#allocation4], 4294967264 }
  0x6c   :  { %171 = vsyncpa [#allocation4], 1 }
  0x6d   :  { %172 = vsyncpa [#allocation5], 1 }
  0x6e   :  { %173 = vsyncpa [#allocation6], 1 }
  0x6f   :  { %174 = vsyncpa [#allocation9], 1 }

</bundles_post_ra>
